<compile_context>
chip_gen: v5e
topology: v5e:2x2
jax: 0.10.0
libtpu: 0.0.40
codegen_flags: <defaults>
</compile_context>

<pallas_src>
import jax
import jax.numpy as jnp
from jax.experimental import pallas as pl
from jax.experimental.pallas import tpu as pltpu


def _mlp_kernel(xT_ref, w1_ref, b1_ref, w2_ref, b2_ref, w3_ref, b3_ref, o_ref):
    # xT: (12, TB); batch lives on the lane axis.
    xT = xT_ref[...]
    # cf1: (64,12) @ (12,TB) + (64,1) -> relu
    h1 = jnp.dot(w1_ref[...], xT, preferred_element_type=jnp.float32) + b1_ref[...]
    h1 = jnp.maximum(h1, 0.0)
    # cf2: (32,64) @ (64,TB) + (32,1) -> relu
    h2 = jnp.dot(w2_ref[...], h1, preferred_element_type=jnp.float32) + b2_ref[...]
    h2 = jnp.maximum(h2, 0.0)
    # output: (1,32) @ (32,TB) + (1,1) -> sigmoid, stored as a lane-dense (1, TB) row
    z = jnp.dot(w3_ref[...], h2, preferred_element_type=jnp.float32) + b3_ref[...]
    # jax.nn.sigmoid lowers to EUP transcendentals (free slot) and is
    # numerically robust; keeps VALU free for the relu/bias work.
    o_ref[...] = jax.nn.sigmoid(z)


_TB_MAX = 4096  # lane-axis batch tile (multiple of 128), amortizes per-step overhead


def churn_modelling_forward(x, params):
    """x: (B, 12) float32 -> (B, 1) float32. Weights in PyTorch (out, in) layout."""
    w1, b1, w2, b2, w3, b3 = params
    B, F = x.shape
    assert F == 12, F

    # Lane tile: multiple of 128, capped at _TB_MAX; pad batch up to a multiple of it.
    tb = min(_TB_MAX, ((B + 127) // 128) * 128)
    padded_b = ((B + tb - 1) // tb) * tb
    num_tiles = padded_b // tb

    # Batch-on-lanes input: (12, padded_B), zero-padded in the batch tail.
    # TODO(synk): if the caller can produce x feature-major upstream, this
    # transpose (one extra HBM pass over x) disappears.
    xT = jnp.zeros((F, padded_b), jnp.float32).at[:, :B].set(x.T)

    const = lambda shape: pl.BlockSpec(shape, lambda i: (0, 0))  # VMEM-resident weights

    outT = pl.pallas_call(
        _mlp_kernel,
        out_shape=jax.ShapeDtypeStruct((1, padded_b), jnp.float32),
        grid=(num_tiles,),
        in_specs=[
            pl.BlockSpec((F, tb), lambda i: (0, i)),   # x tile: lane-dense batch slab
            const(w1.shape), const(b1.shape),
            const(w2.shape), const(b2.shape),
            const(w3.shape), const(b3.shape),
        ],
        out_specs=pl.BlockSpec((1, tb), lambda i: (0, i)),  # lane-dense output row
        compiler_params=pltpu.CompilerParams(
            dimension_semantics=("parallel",),  # shard batch tiles across TCs on v7x
        ),
    )(xT, w1, b1, w2, b2, w3, b3)

    return outT[0, :B].reshape(B, 1)


def init_params(key):
    """Deterministic synthetic init matching nn.Linear (12->64->32->1).

    Weights stored PyTorch-style as (out_features, in_features); biases as
    (out_features, 1) columns so they broadcast over the lane (batch) axis.
    """
    k1, k2, k3, k4, k5, k6 = jax.random.split(key, 6)

    def uinit(k, shape, fan_in):
        bound = 1.0 / jnp.sqrt(fan_in)
        return jax.random.uniform(k, shape, jnp.float32, -bound, bound)

    w1 = uinit(k1, (64, 12), 12.0)
    b1 = uinit(k2, (64, 1), 12.0)
    w2 = uinit(k3, (32, 64), 64.0)
    b2 = uinit(k4, (32, 1), 64.0)
    w3 = uinit(k5, (1, 32), 32.0)
    b3 = uinit(k6, (1, 1), 32.0)
    return (w1, b1, w2, b2, w3, b3)


def _reference(x, params):
    w1, b1, w2, b2, w3, b3 = params
    h1 = jax.nn.relu(x @ w1.T + b1.T)
    h2 = jax.nn.relu(h1 @ w2.T + b2.T)
    return jax.nn.sigmoid(h2 @ w3.T + b3.T)


if __name__ == "__main__":
    key = jax.random.PRNGKey(0)
    kx, kp = jax.random.split(key)

    B = 300  # deliberately not a multiple of 128 to exercise padding + slicing
    x = jax.random.normal(kx, (B, 12), jnp.float32)
    params = init_params(kp)

    out = jax.jit(churn_modelling_forward)(x, params)
    out = jax.block_until_ready(out)

    ref = _reference(x, params)
    assert out.shape == (B, 1), out.shape
    assert jnp.allclose(out, ref, atol=1e-5, rtol=1e-5), (out, ref)

    print("KERNEL_OK")
</pallas_src>

<mosaic_0001>
module attributes {stable_mosaic.version = 11 : i64} {
  func.func @_mlp_kernel(%arg0: i32, %arg1: memref<12x384xf32, #tpu.memory_space<vmem>>, %arg2: memref<64x12xf32, #tpu.memory_space<vmem>>, %arg3: memref<64x1xf32, #tpu.memory_space<vmem>>, %arg4: memref<32x64xf32, #tpu.memory_space<vmem>>, %arg5: memref<32x1xf32, #tpu.memory_space<vmem>>, %arg6: memref<1x32xf32, #tpu.memory_space<vmem>>, %arg7: memref<1x1xf32, #tpu.memory_space<vmem>>, %arg8: memref<1x384xf32, #tpu.memory_space<vmem>>) attributes {dimension_semantics = [#tpu.dimension_semantics<parallel>], iteration_bounds = array<i64: 1>, scalar_prefetch = 0 : i64, scratch_operands = 0 : i64, tpu.core_type = #tpu.core_type<tc>, window_params = [{transform_indices = @transform_0, window_bounds = array<i64: 12, 384>}, {pipeline_mode = #tpu.pipeline_mode<synchronous>, transform_indices = @transform_1, window_bounds = array<i64: 64, 12>}, {pipeline_mode = #tpu.pipeline_mode<synchronous>, transform_indices = @transform_2, window_bounds = array<i64: 64, 1>}, {pipeline_mode = #tpu.pipeline_mode<synchronous>, transform_indices = @transform_3, window_bounds = array<i64: 32, 64>}, {pipeline_mode = #tpu.pipeline_mode<synchronous>, transform_indices = @transform_4, window_bounds = array<i64: 32, 1>}, {pipeline_mode = #tpu.pipeline_mode<synchronous>, transform_indices = @transform_5, window_bounds = array<i64: 1, 32>}, {pipeline_mode = #tpu.pipeline_mode<synchronous>, transform_indices = @transform_6, window_bounds = array<i64: 1, 1>}, {transform_indices = @transform_7, window_bounds = array<i64: 1, 384>}]} {
    %c0 = arith.constant 0 : index
    %c0_0 = arith.constant 0 : index
    %0 = vector.load %arg1[%c0, %c0_0] : memref<12x384xf32, #tpu.memory_space<vmem>>, vector<12x384xf32>
    %c0_1 = arith.constant 0 : index
    %c0_2 = arith.constant 0 : index
    %1 = vector.load %arg2[%c0_1, %c0_2] : memref<64x12xf32, #tpu.memory_space<vmem>>, vector<64x12xf32>
    %cst = arith.constant dense<0.000000e+00> : vector<64x384xf32>
    %2 = tpu.matmul %1, %0, %cst {dimension_numbers = #tpu.dot_dimension_numbers<[1], [0], [0], [1], [0, 0, 1, 1], [], []>} : vector<64x12xf32>, vector<12x384xf32>, vector<64x384xf32> -> vector<64x384xf32>
    %c0_3 = arith.constant 0 : index
    %c0_4 = arith.constant 0 : index
    %3 = vector.load %arg3[%c0_3, %c0_4] : memref<64x1xf32, #tpu.memory_space<vmem>>, vector<64x1xf32>
    %4 = vector.broadcast %3 : vector<64x1xf32> to vector<64x384xf32>
    %5 = arith.addf %2, %4 : vector<64x384xf32>
    %cst_5 = arith.constant 0.000000e+00 : f32
    %6 = vector.broadcast %cst_5 : f32 to vector<64x384xf32>
    %7 = arith.maximumf %5, %6 : vector<64x384xf32>
    %c0_6 = arith.constant 0 : index
    %c0_7 = arith.constant 0 : index
    %8 = vector.load %arg4[%c0_6, %c0_7] : memref<32x64xf32, #tpu.memory_space<vmem>>, vector<32x64xf32>
    %cst_8 = arith.constant dense<0.000000e+00> : vector<32x384xf32>
    %9 = tpu.matmul %8, %7, %cst_8 {dimension_numbers = #tpu.dot_dimension_numbers<[1], [0], [0], [1], [0, 0, 1, 1], [], []>} : vector<32x64xf32>, vector<64x384xf32>, vector<32x384xf32> -> vector<32x384xf32>
    %c0_9 = arith.constant 0 : index
    %c0_10 = arith.constant 0 : index
    %10 = vector.load %arg5[%c0_9, %c0_10] : memref<32x1xf32, #tpu.memory_space<vmem>>, vector<32x1xf32>
    %11 = vector.broadcast %10 : vector<32x1xf32> to vector<32x384xf32>
    %12 = arith.addf %9, %11 : vector<32x384xf32>
    %cst_11 = arith.constant 0.000000e+00 : f32
    %13 = vector.broadcast %cst_11 : f32 to vector<32x384xf32>
    %14 = arith.maximumf %12, %13 : vector<32x384xf32>
    %c0_12 = arith.constant 0 : index
    %c0_13 = arith.constant 0 : index
    %15 = vector.load %arg6[%c0_12, %c0_13] : memref<1x32xf32, #tpu.memory_space<vmem>>, vector<1x32xf32>
    %cst_14 = arith.constant dense<0.000000e+00> : vector<1x384xf32>
    %16 = tpu.matmul %15, %14, %cst_14 {dimension_numbers = #tpu.dot_dimension_numbers<[1], [0], [0], [1], [0, 0, 1, 1], [], []>} : vector<1x32xf32>, vector<32x384xf32>, vector<1x384xf32> -> vector<1x384xf32>
    %c0_15 = arith.constant 0 : index
    %c0_16 = arith.constant 0 : index
    %17 = vector.load %arg7[%c0_15, %c0_16] : memref<1x1xf32, #tpu.memory_space<vmem>>, vector<1x1xf32>
    %18 = vector.broadcast %17 : vector<1x1xf32> to vector<1x384xf32>
    %19 = arith.addf %16, %18 : vector<1x384xf32>
    %20 = arith.negf %19 : vector<1x384xf32>
    %21 = math.exp %20 : vector<1x384xf32>
    %cst_17 = arith.constant 1.000000e+00 : f32
    %22 = vector.broadcast %cst_17 : f32 to vector<1x384xf32>
    %23 = arith.addf %22, %21 : vector<1x384xf32>
    %24 = arith.divf %22, %23 : vector<1x384xf32>
    %c0_18 = arith.constant 0 : index
    %c0_19 = arith.constant 0 : index
    %25 = vector.load %arg8[%c0_18, %c0_19] : memref<1x384xf32, #tpu.memory_space<vmem>>, vector<1x384xf32>
    tpu.vector_store %arg8[%c0_18, %c0_19], %24 {strides = array<i32>} : memref<1x384xf32, #tpu.memory_space<vmem>>, vector<1x384xf32>,
    return
  }
  func.func @transform_0(%arg0: i32) -> (i32, i32) {
    %c0_i32 = arith.constant 0 : i32
    %c0_i32_0 = arith.constant 0 : i32
    return %c0_i32, %arg0 : i32, i32
  }
  func.func @transform_1(%arg0: i32) -> (i32, i32) {
    %c0_i32 = arith.constant 0 : i32
    %c0_i32_0 = arith.constant 0 : i32
    %c0_i32_1 = arith.constant 0 : i32
    return %c0_i32, %c0_i32_0 : i32, i32
  }
  func.func @transform_2(%arg0: i32) -> (i32, i32) {
    %c0_i32 = arith.constant 0 : i32
    %c0_i32_0 = arith.constant 0 : i32
    %c0_i32_1 = arith.constant 0 : i32
    return %c0_i32, %c0_i32_0 : i32, i32
  }
  func.func @transform_3(%arg0: i32) -> (i32, i32) {
    %c0_i32 = arith.constant 0 : i32
    %c0_i32_0 = arith.constant 0 : i32
    %c0_i32_1 = arith.constant 0 : i32
    return %c0_i32, %c0_i32_0 : i32, i32
  }
  func.func @transform_4(%arg0: i32) -> (i32, i32) {
    %c0_i32 = arith.constant 0 : i32
    %c0_i32_0 = arith.constant 0 : i32
    %c0_i32_1 = arith.constant 0 : i32
    return %c0_i32, %c0_i32_0 : i32, i32
  }
  func.func @transform_5(%arg0: i32) -> (i32, i32) {
    %c0_i32 = arith.constant 0 : i32
    %c0_i32_0 = arith.constant 0 : i32
    %c0_i32_1 = arith.constant 0 : i32
    return %c0_i32, %c0_i32_0 : i32, i32
  }
  func.func @transform_6(%arg0: i32) -> (i32, i32) {
    %c0_i32 = arith.constant 0 : i32
    %c0_i32_0 = arith.constant 0 : i32
    %c0_i32_1 = arith.constant 0 : i32
    return %c0_i32, %c0_i32_0 : i32, i32
  }
  func.func @transform_7(%arg0: i32) -> (i32, i32) {
    %c0_i32 = arith.constant 0 : i32
    %c0_i32_0 = arith.constant 0 : i32
    return %c0_i32, %arg0 : i32, i32
  }
}

</mosaic_0001>

<bundles_post_ra>
// kernel: churn_modelling_forward.1
= control target key start
LH: loop header
LB: loop body
LE: loop exit
PB: predicated region body
PF: predicated region fallthrough
CT: control target
= control target key end

     0   :  { %vm115_vm0 = vcmask 1043456   ;;  %v623_v0 = vmov 0   ;;  %vm90_vm1 = vcmask 97280   ;;  %vm300_vm2 = vcmask 523264   ;;  %s861_s2 = inlined_call_operand.vmem [shape: f32[64,1], index: 2, kind: input, shape index: {}]   ;;  %s862_s0 = inlined_call_operand.vmem [shape: f32[12,384], index: 0, kind: input, shape index: {}]   ;;  %s863_s1 = inlined_call_operand.vmem [shape: f32[64,12], index: 1, kind: input, shape index: {}]   ;;  %s864_s6 = inlined_call_operand.<no memory space> [shape: f32[1,1], index: 6, kind: input, shape index: {}]   ;;  %s865_s4 = inlined_call_operand.vmem [shape: f32[32,1], index: 4, kind: input, shape index: {}]   ;;  %s866_s3 = inlined_call_operand.vmem [shape: f32[32,64], index: 3, kind: input, shape index: {}]   ;;  %s867_s5 = inlined_call_operand.vmem [shape: f32[1,32], index: 5, kind: input, shape index: {}]   ;;  %s868_s7 = inlined_call_operand.vmem [shape: f32[1,384], index: 7, kind: output, shape index: {}]  }
   0x1   :  { %609 = vset.pattern.permute.xlu1 %v623_v0  ;;  %v47_v1 = vld [vmem:[%s861_s2 + $0x28] sm:$0xff]  ;;  %v31_v2 = vld [vmem:[%s862_s0 + $0x18] sm:$0xf]  ;;  %v32_v3 = vld [vmem:[%s862_s0 + $0x20] sm:$0xf]  ;;  %608 = vset.pattern.permute.xlu0 %v623_v0  ;;  %v12_v17 = vstv %s864_s6  ;;  %vm420_vm3 = vcmask 261120  }
   0x2   :  { %77 = vperm.xlu1 %609, %v47_v1   ;;  %560 = vmatpush.msk.msra.mxu0 %vm115_vm0, %v31_v2  ;;  %v28_v4 = vld [vmem:[%s862_s0] sm:$0xff]  ;;  %v29_v5 = vld [vmem:[%s862_s0 + $0x8] sm:$0xff]  ;;  %v688_v7 = vld [vmem:[%s863_s1 + $0x38] sm:$0xff]  ;;  %13 = vst [vmem:[#allocation2] sm:$0x1] %v12_v17  ;;  %vm546_vm15 = vcmask 1040384  }
   0x3   :  { %605 = vmatpush.msk.msra.mxu2 %vm115_vm0, %v31_v2  ;;  %569 = vmatpush.msk.msra.mxu1 %vm115_vm0, %v32_v3  ;;  %v34_v6 = vld [vmem:[%s863_s1] sm:$0xff]  ;;  %v49_v8 = vld [vmem:[%s861_s2 + $0x38] sm:$0xff]  ;;  %v33_v9 = vld [vmem:[%s862_s0 + $0x28] sm:$0xf] }
   0x4   :  { %140 = vmatpush.msra.mxu0 %v28_v4  ;;  %87 = vperm.xlu0 %608, %v49_v8   ;;  %v30_v10 = vld [vmem:[%s862_s0 + $0x10] sm:$0xff]  ;;  %v46_v11 = vld [vmem:[%s861_s2 + $0x20] sm:$0xff]  ;;  %v35_v13 = vld [vmem:[%s863_s1 + $0x8] sm:$0xff] }
   0x5   :  { %606 = vmatpush.msra.mxu2 %v28_v4  ;;  %181 = vmatpush.msra.mxu1 %v29_v5  ;;  %v48_v12 = vld [vmem:[%s861_s2 + $0x30] sm:$0xff]  ;;  %v42_v14 = vld [vmem:[%s861_s2] sm:$0xff]  ;;  %v45_v15 = vld [vmem:[%s861_s2 + $0x18] sm:$0xff] }
   0x6   :  { %561 = vmatmul.msk.f32.vlgmr.msra.gmra.mxu0 %vm90_vm1, %v34_v6  ;;  %568 = vmatmul.msk.f32.vlgmr.msra.gmra.mxu2 %vm90_vm1, %v688_v7  ;;  %v43_v16 = vld [vmem:[%s861_s2 + $0x8] sm:$0xff]  ;;  %v36_v18 = vld [vmem:[%s863_s1 + $0x10] sm:$0xff]  ;;  %v37_v22 = vld [vmem:[%s863_s1 + $0x18] sm:$0xff] }
   0x7   :  { %570 = vmatmul.msk.f32.vlgmr.msra.gmra.mxu1 %vm90_vm1, %v34_v6  ;;  %578 = vmatpush.msk.msrb.mxu2 %vm115_vm0, %v33_v9  ;;  %v44_v19 = vld [vmem:[%s861_s2 + $0x10] sm:$0xff]  ;;  %v277_v20 = vld [vmem:[%s865_s4 + $0x8] sm:$0xff]  ;;  %v38_v24 = vld [vmem:[%s863_s1 + $0x20] sm:$0xff] }
   0x8   :  { %610 = vset.pattern.permute.xlu2 %v623_v0  ;;  %v278_v21 = vld [vmem:[%s865_s4 + $0x10] sm:$0xff]  ;;  %v279_v25 = vld [vmem:[%s865_s4 + $0x18] sm:$0xff]  ;;  %v39_v26 = vld [vmem:[%s863_s1 + $0x28] sm:$0xff] }
   0x9   :  { %222 = vmatpush.msrb.mxu2 %v30_v10  ;;  %67 = vperm.xlu2 %610, %v45_v15   ;;  %v413_v23 = vld [vmem:[#allocation2] sm:$0x1]  ;;  %v40_v28 = vld [vmem:[%s863_s1 + $0x30] sm:$0xff] }
   0xa   :  { %72 = vperm.xlu1 %609, %v46_v11   ;;  %v276_v27 = vld [vmem:[%s865_s4] sm:$0xff] }
   0xc   :  { %82 = vperm.xlu0 %608, %v48_v12  }
   0xe   :  { %562 = vmatmul.msk.f32.gmra.mxu0 %vm90_vm1, %v35_v13  ;;  %579 = vmatmul.msk.f32.vlgmr.msrb.gmra.mxu2 %vm90_vm1, %v34_v6 }
   0xf   :  { %571 = vmatmul.msk.f32.gmra.mxu1 %vm90_vm1, %v35_v13 }
  0x11   :  { %62 = vperm.xlu2 %610, %v44_v19  }
  0x12   :  { %52 = vperm.xlu1 %609, %v42_v14   ;;  %v272_v14 = vld [vmem:[%s866_s3] sm:$0xff] }
  0x14   :  { %57 = vperm.xlu0 %608, %v43_v16  }
  0x16   :  { %563 = vmatmul.msk.f32.gmra.mxu0 %vm90_vm1, %v36_v18  ;;  %580 = vmatmul.msk.f32.gmra.mxu2 %vm90_vm1, %v35_v13 }
  0x17   :  { %572 = vmatmul.msk.f32.gmra.mxu1 %vm90_vm1, %v36_v18 }
  0x19   :  { %297 = vperm.xlu2 %610, %v279_v25  }
  0x1a   :  { %287 = vperm.xlu1 %609, %v277_v20  }
  0x1c   :  { %292 = vperm.xlu0 %608, %v278_v21  }
  0x1e   :  { %564 = vmatmul.msk.f32.gmra.mxu0 %vm90_vm1, %v37_v22  ;;  %581 = vmatmul.msk.f32.gmra.mxu2 %vm90_vm1, %v36_v18 }
  0x1f   :  { %573 = vmatmul.msk.f32.gmra.mxu1 %vm90_vm1, %v37_v22 }
  0x21   :  { %282 = vperm.xlu2 %610, %v276_v27  }
  0x24   :  { %416 = vperm.xlu0 %608, %v413_v23  }
  0x26   :  { %565 = vmatmul.msk.f32.gmra.mxu0 %vm90_vm1, %v38_v24  ;;  %582 = vmatmul.msk.f32.gmra.mxu2 %vm90_vm1, %v37_v22 }
  0x27   :  { %574 = vmatmul.msk.f32.gmra.mxu1 %vm90_vm1, %v38_v24 }
  0x2e   :  { %566 = vmatmul.msk.f32.gmra.mxu0 %vm90_vm1, %v39_v26  ;;  %583 = vmatmul.msk.f32.gmra.mxu2 %vm90_vm1, %v38_v24 }
  0x2f   :  { %575 = vmatmul.msk.f32.gmra.mxu1 %vm90_vm1, %v39_v26 }
  0x36   :  { %567 = vmatmul.msk.f32.gmra.mxu0 %vm90_vm1, %v40_v28  ;;  %584 = vmatmul.msk.f32.gmra.mxu2 %vm90_vm1, %v39_v26  ;;  %v273_v26 = vld [vmem:[%s866_s3 + $0x8] sm:$0xff] }
  0x37   :  { %576 = vmatmul.msk.f32.gmra.mxu1 %vm90_vm1, %v40_v28 }
  0x3e   :  { %585 = vmatmul.msk.f32.gmra.mxu2 %vm90_vm1, %v40_v28 }
  0x3f   :  { %577 = vmatmul.msk.f32.gmra.mxu1 %vm90_vm1, %v688_v7 }
  0x46   :  { %586 = vmatmul.msk.f32.gmra.mxu2 %vm90_vm1, %v688_v7  ;;  %vm548_vm1 = vcmask 1041408  }
  0x63   :  { %v793_v50 = vpop.permute.xlu2 %67 }
  0x6b   :  { %v63_v60 = vpop.permute.xlu2 %62 }
  0x74   :  { %v78_v46 = vpop.permute.xlu1 %77 }
  0x76   :  { %v780_v31 = vpop.permute.xlu0 %87 }
  0x7c   :  { %v73_v52 = vpop.permute.xlu1 %72 }
  0x7e   :  { %v83_v51 = vpop.permute.xlu0 %82 }
  0x83   :  { %v142_v29 = vpop.f32.mrf.mxu0 }
  0x84   :  { %v778_v30 = vpop.f32.mrf.mxu1  ;;  %v798_v3 = vpop.permute.xlu1 %52 }
  0x85   :  { %v143_v8 = vadd.f32 %v142_v29, %v798_v3 }
  0x86   :  { %v796_v63 = vpop.permute.xlu0 %57 }
  0x87   :  { %v248_v13 = vmax.f32 %v143_v8, 0.0 }
  0x89   :  { %v163_v32 = vpop.f32.mrf.mxu2 }
  0x8a   :  { %v164_v33 = vadd.f32 %v163_v32, %v780_v31 }
  0x8b   :  { %v145_v34 = vpop.f32.mrf.mxu0 }
  0x8c   :  { %v783_v35 = vpop.f32.mrf.mxu1  ;;  %v269_v36 = vmax.f32 %v164_v33, 0.0  ;;  %v146_v4 = vadd.f32 %v145_v34, %v796_v63 }
  0x8d   :  { %v187_v27 = vadd.f32 %v783_v35, %v796_v63 }
  0x8e   :  { %321 = vmatpush.msra.mxu3 %v269_v36  ;;  %v251_v9 = vmax.f32 %v146_v4, 0.0  ;;  %v412_v4 = vld [vmem:[%s867_s5] sm:$0x1] }
  0x91   :  { %v785_v37 = vpop.f32.mrf.mxu2 }
  0x93   :  { %v148_v38 = vpop.f32.mrf.mxu0 }
  0x94   :  { %v189_v39 = vpop.f32.mrf.mxu1  ;;  %v149_v1 = vadd.f32 %v148_v38, %v63_v60  ;;  %v252_v38 = vmax.f32 %v187_v27, 0.0 }
  0x95   :  { %v190_v22 = vadd.f32 %v189_v39, %v63_v60 }
  0x96   :  { %v254_v7 = vmax.f32 %v149_v1, 0.0 }
  0x97   :  { %v255_v33 = vmax.f32 %v190_v22, 0.0 }
  0x99   :  { %v787_v40 = vpop.f32.mrf.mxu2 }
  0x9b   :  { %v151_v41 = vpop.f32.mrf.mxu0 }
  0x9c   :  { %v192_v42 = vpop.f32.mrf.mxu1  ;;  %v152_v61 = vadd.f32 %v151_v41, %v793_v50 }
  0x9d   :  { %v193_v19 = vadd.f32 %v192_v42, %v793_v50 }
  0x9e   :  { %v257_v5 = vmax.f32 %v152_v61, 0.0 }
  0x9f   :  { %v258_v28 = vmax.f32 %v193_v19, 0.0 }
  0xa1   :  { %v789_v43 = vpop.f32.mrf.mxu2 }
  0xa2   :  { %v231_v35 = vadd.f32 %v789_v43, %v63_v60 }
  0xa3   :  { %v154_v44 = vpop.f32.mrf.mxu0 }
  0xa4   :  { %v195_v45 = vpop.f32.mrf.mxu1  ;;  %v155_v58 = vadd.f32 %v154_v44, %v73_v52  ;;  %v256_v43 = vmax.f32 %v231_v35, 0.0 }
  0xa5   :  { %v196_v17 = vadd.f32 %v195_v45, %v73_v52  ;;  %v274_v45 = vld [vmem:[%s866_s3 + $0x10] sm:$0xff] }
  0xa6   :  { %v260_v2 = vmax.f32 %v155_v58, 0.0  ;;  %v288_v58 = vpop.permute.xlu1 %287 }
  0xa7   :  { %v261_v23 = vmax.f32 %v196_v17, 0.0 }
  0xa9   :  { %v791_v47 = vpop.f32.mrf.mxu2 }
  0xaa   :  { %v234_v39 = vadd.f32 %v791_v47, %v793_v50  ;;  %v225_v47 = vadd.f32 %v785_v37, %v798_v3  ;;  %v275_v50 = vld [vmem:[%s866_s3 + $0x18] sm:$0xff] }
  0xab   :  { %v157_v48 = vpop.f32.mrf.mxu0 }
  0xac   :  { %v198_v49 = vpop.f32.mrf.mxu1  ;;  %v158_v55 = vadd.f32 %v157_v48, %v78_v46 }
  0xad   :  { %v199_v15 = vadd.f32 %v198_v49, %v78_v46  ;;  %v250_v49 = vmax.f32 %v225_v47, 0.0 }
  0xae   :  { %v263_v62 = vmax.f32 %v158_v55, 0.0 }
  0xaf   :  { %v264_v20 = vmax.f32 %v199_v15, 0.0 }
  0xb1   :  { %v236_v53 = vpop.f32.mrf.mxu2 }
  0xb2   :  { %v237_v34 = vadd.f32 %v236_v53, %v73_v52  ;;  %v298_v52 = vpop.permute.xlu2 %297 }
  0xb3   :  { %v160_v54 = vpop.f32.mrf.mxu0 }
  0xb4   :  { %v161_v56 = vadd.f32 %v160_v54, %v83_v51  ;;  %v201_v57 = vpop.f32.mrf.mxu1  ;;  %v262_v42 = vmax.f32 %v237_v34, 0.0  ;;  %v293_v54 = vpop.permute.xlu0 %292 }
  0xb5   :  { %v202_v12 = vadd.f32 %v201_v57, %v83_v51 }
  0xb6   :  { %v266_v59 = vmax.f32 %v161_v56, 0.0 }
  0xb7   :  { %v267_v18 = vmax.f32 %v202_v12, 0.0 }
  0xb8   :  { %322 = vmatpush.msra.mxu3 %v266_v59 }
  0xb9   :  { %v239_v0 = vpop.f32.mrf.mxu2 }
  0xba   :  { %323 = vmatpush.msra.mxu3 %v263_v62  ;;  %v240_v29 = vadd.f32 %v239_v0, %v78_v46  ;;  %v259_v46 = vmax.f32 %v234_v39, 0.0  ;;  %v283_v62 = vpop.permute.xlu2 %282 }
  0xbc   :  { %324 = vmatpush.msra.mxu3 %v260_v2  ;;  %v204_v6 = vpop.f32.mrf.mxu1  ;;  %v265_v41 = vmax.f32 %v240_v29, 0.0  ;;  %v417_v27 = vpop.permute.xlu0 %416 }
  0xbd   :  { %v205_v10 = vadd.f32 %v204_v6, %v780_v31 }
  0xbe   :  { %325 = vmatpush.msra.mxu3 %v257_v5 }
  0xbf   :  { %v270_v16 = vmax.f32 %v205_v10, 0.0 }
  0xc0   :  { %326 = vmatpush.msra.mxu3 %v254_v7 }
  0xc1   :  { %v242_v11 = vpop.f32.mrf.mxu2 }
  0xc2   :  { %327 = vmatpush.msra.mxu3 %v251_v9  ;;  %v243_v24 = vadd.f32 %v242_v11, %v83_v51 }
  0xc4   :  { %328 = vmatpush.msra.mxu3 %v248_v13  ;;  %v268_v36 = vmax.f32 %v243_v24, 0.0 }
  0xc5   :  { %587 = vmatmul.msk.f32.vlgmr.msra.gmra.mxu3 %vm300_vm2, %v272_v14 }
  0xc6   :  { %350 = vmatpush.msrb.mxu3 %v270_v16 }
  0xc8   :  { %351 = vmatpush.msrb.mxu3 %v267_v18 }
  0xc9   :  { %v245_v21 = vpop.f32.mrf.mxu2 }
  0xca   :  { %v246_v25 = vadd.f32 %v245_v21, %v780_v31  ;;  %352 = vmatpush.msrb.mxu3 %v264_v20  ;;  %v184_v31 = vadd.f32 %v778_v30, %v798_v3  ;;  %v228_v30 = vadd.f32 %v787_v40, %v796_v63 }
  0xcc   :  { %v271_v32 = vmax.f32 %v246_v25, 0.0  ;;  %353 = vmatpush.msrb.mxu3 %v261_v23  ;;  %v249_v44 = vmax.f32 %v184_v31, 0.0  ;;  %v253_v48 = vmax.f32 %v228_v30, 0.0 }
  0xcd   :  { %588 = vmatmul.msk.f32.gmra.mxu3 %vm300_vm2, %v273_v26 }
  0xce   :  { %354 = vmatpush.msrb.mxu3 %v258_v28  ;;  %379 = vmatpush.msrb.mxu0 %v271_v32  ;;  %v419_v28 = vperm.slane %v417_v27, 0 }
  0xd0   :  { %355 = vmatpush.msrb.mxu3 %v255_v33  ;;  %380 = vmatpush.msrb.mxu0 %v268_v36 }
  0xd2   :  { %356 = vmatpush.msrb.mxu3 %v252_v38  ;;  %381 = vmatpush.msrb.mxu0 %v265_v41 }
  0xd4   :  { %357 = vmatpush.msrb.mxu3 %v249_v44  ;;  %382 = vmatpush.msrb.mxu0 %v262_v42 }
  0xd5   :  { %589 = vmatmul.msk.f32.gmra.mxu3 %vm300_vm2, %v274_v45 }
  0xd6   :  { %383 = vmatpush.msrb.mxu0 %v259_v46 }
  0xd8   :  { %384 = vmatpush.msrb.mxu0 %v256_v43 }
  0xda   :  { %385 = vmatpush.msrb.mxu0 %v253_v48 }
  0xdc   :  { %386 = vmatpush.msrb.mxu0 %v250_v49 }
  0xdd   :  { %590 = vmatmul.msk.f32.gmra.mxu3 %vm300_vm2, %v275_v50  ;;  %595 = vmatmul.msk.f32.vlgmr.msrb.gmra.mxu0 %vm300_vm2, %v272_v14 }
  0xe5   :  { %591 = vmatmul.msk.f32.vlgmr.msrb.gmra.mxu3 %vm300_vm2, %v272_v14  ;;  %596 = vmatmul.msk.f32.gmra.mxu0 %vm300_vm2, %v273_v26 }
  0xed   :  { %592 = vmatmul.msk.f32.gmra.mxu3 %vm300_vm2, %v273_v26  ;;  %597 = vmatmul.msk.f32.gmra.mxu0 %vm300_vm2, %v274_v45 }
  0xf5   :  { %593 = vmatmul.msk.f32.gmra.mxu3 %vm300_vm2, %v274_v45  ;;  %598 = vmatmul.msk.f32.gmra.mxu0 %vm300_vm2, %v275_v50 }
  0xfd   :  { %594 = vmatmul.msk.f32.gmra.mxu3 %vm300_vm2, %v275_v50 }
 0x148   :  { %v330_v37 = vpop.f32.mrf.mxu3 }
 0x149   :  { %v331_v63 = vadd.f32 %v330_v37, %v283_v62 }
 0x14b   :  { %v400_v3 = vmax.f32 %v331_v63, 0.0 }
 0x150   :  { %v333_v40 = vpop.f32.mrf.mxu3 }
 0x151   :  { %v334_v60 = vadd.f32 %v333_v40, %v288_v58 }
 0x153   :  { %v403_v1 = vmax.f32 %v334_v60, 0.0 }
 0x158   :  { %v336_v51 = vpop.f32.mrf.mxu3 }
 0x159   :  { %v337_v56 = vadd.f32 %v336_v51, %v293_v54 }
 0x15a   :  { %v388_v53 = vpop.f32.mrf.mxu0 }
 0x15b   :  { %v406_v0 = vmax.f32 %v337_v56, 0.0  ;;  %v389_v12 = vadd.f32 %v388_v53, %v283_v62 }
 0x15d   :  { %v402_v16 = vmax.f32 %v389_v12, 0.0 }
 0x160   :  { %v339_v55 = vpop.f32.mrf.mxu3 }
 0x161   :  { %v340_v57 = vadd.f32 %v339_v55, %v298_v52 }
 0x162   :  { %v391_v59 = vpop.f32.mrf.mxu0 }
 0x163   :  { %v409_v61 = vmax.f32 %v340_v57, 0.0  ;;  %v392_v10 = vadd.f32 %v391_v59, %v288_v58 }
 0x165   :  { %436 = vmatpush.msrb.mxu1 %v409_v61  ;;  %v405_v15 = vmax.f32 %v392_v10, 0.0 }
 0x167   :  { %437 = vmatpush.msrb.mxu1 %v406_v0 }
 0x168   :  { %v359_v2 = vpop.f32.mrf.mxu3 }
 0x169   :  { %438 = vmatpush.msrb.mxu1 %v403_v1  ;;  %v360_v22 = vadd.f32 %v359_v2, %v283_v62 }
 0x16a   :  { %v394_v5 = vpop.f32.mrf.mxu0 }
 0x16b   :  { %439 = vmatpush.msrb.mxu1 %v400_v3  ;;  %v395_v8 = vadd.f32 %v394_v5, %v293_v54  ;;  %v401_v25 = vmax.f32 %v360_v22, 0.0  ;;  %v551_v5 = vlaneseq }
 0x16c   :  { %599 = vmatmul.msk.f32.vlgmr.msrb.gmra.mxu1 %vm420_vm3, %v412_v4 }
 0x16d   :  { %v408_v13 = vmax.f32 %v395_v8, 0.0  ;;  %vm553_vm2 = vcmp.lt.s32.totalorder %v551_v5, 384 }
 0x170   :  { %v362_v6 = vpop.f32.mrf.mxu3 }
 0x171   :  { %v363_v20 = vadd.f32 %v362_v6, %v288_v58 }
 0x172   :  { %v397_v7 = vpop.f32.mrf.mxu0 }
 0x173   :  { %v398_v9 = vadd.f32 %v397_v7, %v298_v52  ;;  %v404_v24 = vmax.f32 %v363_v20, 0.0 }
 0x175   :  { %v411_v11 = vmax.f32 %v398_v9, 0.0 }
 0x177   :  { %476 = vmatpush.msra.mxu1 %v411_v11 }
 0x178   :  { %v365_v14 = vpop.f32.mrf.mxu3 }
 0x179   :  { %477 = vmatpush.msra.mxu1 %v408_v13  ;;  %v366_v18 = vadd.f32 %v365_v14, %v293_v54 }
 0x17b   :  { %478 = vmatpush.msra.mxu1 %v405_v15  ;;  %v407_v23 = vmax.f32 %v366_v18, 0.0 }
 0x17d   :  { %479 = vmatpush.msra.mxu1 %v402_v16 }
 0x17e   :  { %601 = vmatmul.msk.f32.vlgmr.msra.gmra.mxu1 %vm420_vm3, %v412_v4 }
 0x180   :  { %v368_v17 = vpop.f32.mrf.mxu3 }
 0x181   :  { %v369_v19 = vadd.f32 %v368_v17, %v298_v52 }
 0x183   :  { %v410_v21 = vmax.f32 %v369_v19, 0.0 }
 0x185   :  { %456 = vmatpush.msra.mxu2 %v410_v21 }
 0x187   :  { %457 = vmatpush.msra.mxu2 %v407_v23 }
 0x189   :  { %458 = vmatpush.msra.mxu2 %v404_v24 }
 0x18b   :  { %459 = vmatpush.msra.mxu2 %v401_v25 }
 0x18c   :  { %600 = vmatmul.msk.f32.vlgmr.msra.gmra.mxu2 %vm420_vm3, %v412_v4 }
 0x1e9   :  { %v441_v26 = vpop.f32.mrf.mxu1 }
 0x1ea   :  { %v442_v33 = vadd.f32 %v441_v26, %v419_v28 }
 0x1ec   :  { %v602_v36 = vmul.f32 -1.442695, %v442_v33 }
 0x1fb   :  { %v481_v29 = vpop.f32.mrf.mxu1 }
 0x1fc   :  { %v482_v32 = vadd.f32 %v481_v29, %v419_v28 }
 0x1fe   :  { %v604_v34 = vmul.f32 -1.442695, %v482_v32 }
 0x200   :  { %611 = vpow2.f32 %v604_v34 }
 0x201   :  { %613 = vpow2.f32 %v602_v36 }
 0x206   :  { %v612_v31 = vpop.eup %611 }
 0x207   :  { %v614_v38 = vpop.eup %613  ;;  %v495_v39 = vadd.f32 1.0, %v612_v31 }
 0x208   :  { %v493_v41 = vadd.f32 1.0, %v614_v38 }
 0x209   :  { %615 = vrcp.f32 %v495_v39  ;;  %v537_v54 = vand.u32 2147483648, %v495_v39  ;;  %vm531_vm6 = vweird.f32 %v495_v39  ;;  %v535_v56 = vand.u32 2147483647, %v495_v39 }
 0x20a   :  { %617 = vrcp.f32 %v493_v41  ;;  %vm501_vm9 = vweird.f32 %v493_v41  ;;  %v507_v62 = vand.u32 2147483648, %v493_v41  ;;  %v505_v1 = vand.u32 2147483647, %v493_v41 }
 0x20b   :  { %v538_v2 = vor.u32 1.1754944e-38, %v537_v54  ;;  %vm536_vm12 = vcmp.eq.f32.partialorder %v535_v56, 8.507059e+37 }
 0x20c   :  { %v508_v9 = vor.u32 1.1754944e-38, %v507_v62  ;;  %vm506_vm0 = vcmp.eq.f32.partialorder %v505_v1, 8.507059e+37 }
 0x20f   :  { %v461_v35 = vpop.f32.mrf.mxu2  ;;  %v616_v45 = vpop.eup %615 }
 0x210   :  { %v462_v42 = vadd.f32 %v461_v35, %v419_v28  ;;  %v618_v30 = vpop.eup %617  ;;  %v527_v46 = vmul.f32 %v616_v45, %v495_v39  ;;  %vm532_vm4 = vweird.f32 %v616_v45 }
 0x211   :  { %v497_v48 = vmul.f32 %v618_v30, %v493_v41  ;;  %vm502_vm5 = vweird.f32 %v618_v30  ;;  %vm846_vm7 = vmor %vm531_vm6, %vm532_vm4 }
 0x212   :  { %v603_v44 = vmul.f32 -1.442695, %v462_v42  ;;  %v528_v49 = vsub.f32 1.0, %v527_v46  ;;  %vm852_vm10 = vmor %vm501_vm9, %vm502_vm5 }
 0x213   :  { %v498_v50 = vsub.f32 1.0, %v497_v48 }
 0x214   :  { %619 = vpow2.f32 %v603_v44  ;;  %v529_v37 = vmul.f32 %v616_v45, %v528_v49 }
 0x215   :  { %v499_v51 = vmul.f32 %v618_v30, %v498_v50 }
 0x216   :  { %v530_v53 = vadd.f32 %v616_v45, %v529_v37 }
 0x217   :  { %v500_v58 = vadd.f32 %v618_v30, %v499_v51 }
 0x218   :  { %v534_v63 = vsel %vm846_vm7, %v616_v45, %v530_v53 }
 0x219   :  { %v504_v6 = vsel %vm852_vm10, %v618_v30, %v500_v58  ;;  %v539_v7 = vsel %vm536_vm12, %v538_v2, %v534_v63 }
 0x21a   :  { %v620_v47 = vpop.eup %619  ;;  %v509_v12 = vsel %vm506_vm0, %v508_v9, %v504_v6  ;;  %v545_v13 = vrot.slane %v539_v7, 6 }
 0x21b   :  { %v494_v43 = vadd.f32 1.0, %v620_v47 }
 0x21d   :  { %621 = vrcp.f32 %v494_v43  ;;  %v522_v57 = vand.u32 2147483648, %v494_v43  ;;  %v520_v61 = vand.u32 2147483647, %v494_v43  ;;  %vm516_vm11 = vweird.f32 %v494_v43 }
 0x21f   :  { %v523_v4 = vor.u32 1.1754944e-38, %v522_v57  ;;  %vm521_vm14 = vcmp.eq.f32.partialorder %v520_v61, 8.507059e+37 }
 0x223   :  { %v622_v40 = vpop.eup %621 }
 0x224   :  { %v512_v52 = vmul.f32 %v622_v40, %v494_v43  ;;  %vm517_vm8 = vweird.f32 %v622_v40 }
 0x225   :  { %vm518_vm13 = vmor %vm516_vm11, %vm517_vm8 }
 0x226   :  { %v513_v55 = vsub.f32 1.0, %v512_v52 }
 0x228   :  { %v514_v60 = vmul.f32 %v622_v40, %v513_v55 }
 0x22a   :  { %v515_v3 = vadd.f32 %v622_v40, %v514_v60 }
 0x22c   :  { %v519_v8 = vsel %vm518_vm13, %v622_v40, %v515_v3 }
 0x22d   :  { %v524_v10 = vsel %vm521_vm14, %v523_v4, %v519_v8 }
 0x22e   :  { %v544_v11 = vrot.slane %v524_v10, 7 }
 0x230   :  { %v547_v14 = vsel %vm546_vm15, %v509_v12, %v544_v11 }
 0x231   :  { %v549_v15 = vsel %vm548_vm1, %v547_v14, %v545_v13 }
 0x232   :  { %555 = vst.msk [vmem:[%s868_s7] sm:$0x7] %vm553_vm2, %v549_v15 }

</bundles_post_ra>
